<compile_context>
chip_gen: v6e
topology: v6e:2x2x1
jax: 0.10.0
libtpu: 0.0.40
codegen_flags: <defaults>
</compile_context>

<pallas_src>
import math
import functools

import jax
import jax.numpy as jnp
from jax import lax
from jax.experimental import pallas as pl
from jax.experimental.pallas import tpu as pltpu


_VMEM_LIMIT = 32 * 1024 * 1024      # safe scoped-VMEM budget on v5e/v6e/v7x


def _round_up(x, m):
    return (x + m - 1) // m * m


# ---------------------------------------------------------------------------
# Tiled linear:  y = x @ w + b     (bf16 MXU operands, f32 accumulation)
# ---------------------------------------------------------------------------

def _linear_kernel(x_ref, w_ref, b_ref, o_ref, acc_ref):
    kk = pl.program_id(2)

    @pl.when(kk == 0)
    def _():
        acc_ref[...] = jnp.zeros_like(acc_ref)

    acc_ref[...] += jnp.dot(x_ref[...], w_ref[...],
                            preferred_element_type=jnp.float32)

    @pl.when(kk == pl.num_programs(2) - 1)
    def _():
        o_ref[...] = (acc_ref[...] + b_ref[...].astype(jnp.float32)
                      ).astype(o_ref.dtype)


def pallas_linear(x2d, w, b, out_dtype, *, tm=128, tn=128, tk=128):
    """x2d: (M, K); w: (K, N) (already transposed vs. torch); b: (N,)."""
    M, K = x2d.shape
    Kw, N = w.shape
    assert K == Kw and b.shape == (N,)

    # MXU-aligned, lane-dense tiles.  Zero padding never changes the result.
    tm = min(tm, _round_up(M, 8))
    Mp = _round_up(M, tm)
    Kp = _round_up(K, tk)
    Np = _round_up(N, tn)

    x_pad = jnp.pad(x2d, ((0, Mp - M), (0, Kp - K))).astype(jnp.bfloat16)
    w_pad = jnp.pad(w, ((0, Kp - K), (0, Np - N))).astype(jnp.bfloat16)
    b_pad = jnp.pad(b, (0, Np - N)).reshape(1, Np).astype(jnp.float32)

    out = pl.pallas_call(
        _linear_kernel,
        out_shape=jax.ShapeDtypeStruct((Mp, Np), out_dtype),
        grid_spec=pltpu.PrefetchScalarGridSpec(
            num_scalar_prefetch=0,
            grid=(Mp // tm, Np // tn, Kp // tk),        # reduction axis last
            in_specs=[
                pl.BlockSpec((tm, tk), lambda i, j, kk: (i, kk)),
                pl.BlockSpec((tk, tn), lambda i, j, kk: (kk, j)),
                pl.BlockSpec((1, tn), lambda i, j, kk: (0, j)),
            ],
            out_specs=pl.BlockSpec((tm, tn), lambda i, j, kk: (i, j)),
            scratch_shapes=[pltpu.VMEM((tm, tn), jnp.float32)],
        ),
        compiler_params=pltpu.CompilerParams(
            dimension_semantics=("parallel", "parallel", "arbitrary"),
            vmem_limit_bytes=_VMEM_LIMIT),
    )(x_pad, w_pad, b_pad)
    return out[:M, :N]


# ---------------------------------------------------------------------------
# Flash attention (causal, online softmax)
# ---------------------------------------------------------------------------

def _flash_kernel(q_ref, k_ref, v_ref, o_ref, m_sc, l_sc, acc_sc, *, scale):
    """One (batch*head, q-block, kv-block) step of causal flash attention.

    q_ref/k_ref/v_ref : (1, tq|tk, hd) VMEM blocks (bf16)
    o_ref             : (1, tq, hd) VMEM block, written on the last kv step
    m_sc, l_sc        : (tq, 1) f32 running max / running sum
    acc_sc            : (tq, hd) f32 un-normalized output accumulator
    """
    qi = pl.program_id(1)
    ki = pl.program_id(2)

    @pl.when(ki == 0)
    def _():
        m_sc[...] = jnp.full_like(m_sc, -jnp.inf)
        l_sc[...] = jnp.zeros_like(l_sc)
        acc_sc[...] = jnp.zeros_like(acc_sc)

    def tile_update(apply_causal_mask):
        q = q_ref[0]                                    # (tq, hd) bf16
        k = k_ref[0]                                    # (tk, hd) bf16
        v = v_ref[0]                                    # (tk, hd) bf16
        # QK^T on the MXU: bf16 operands, f32 accumulation; softmax math in f32.
        s = jnp.dot(q, k.T, preferred_element_type=jnp.float32) * scale
        if apply_causal_mask:
            # Only the diagonal tile pays for the mask; tq == tk, so the
            # program-id offsets cancel and a local iota mask is exact.
            tq, tk = s.shape
            row = lax.broadcasted_iota(jnp.int32, (tq, tk), 0)
            col = lax.broadcasted_iota(jnp.int32, (tq, tk), 1)
            s = jnp.where(col <= row, s, -jnp.inf)
        m_prev = m_sc[...]
        m_new = jnp.maximum(m_prev, jnp.max(s, axis=-1, keepdims=True))
        alpha = jnp.exp(m_prev - m_new)
        p = jnp.exp(s - m_new)
        l_sc[...] = alpha * l_sc[...] + jnp.sum(p, axis=-1, keepdims=True)
        acc_sc[...] = alpha * acc_sc[...] + jnp.dot(
            p.astype(v.dtype), v, preferred_element_type=jnp.float32)
        m_sc[...] = m_new

    # Causal tile pruning: strictly-upper tiles (ki > qi) do no compute.
    @pl.when(ki < qi)
    def _():
        tile_update(apply_causal_mask=False)

    @pl.when(ki == qi)
    def _():
        tile_update(apply_causal_mask=True)

    # Finalize: one deferred normalization per q tile via EUP reciprocal.
    @pl.when(ki == pl.num_programs(2) - 1)
    def _():
        inv_l = pl.reciprocal(l_sc[...], approx=True)
        o_ref[0] = (acc_sc[...] * inv_l).astype(o_ref.dtype)


def _flash_attention(q, k, v, *, scale, tq):
    """q, k, v: (B*H, Tp, hd) bf16.  Returns (B*H, Tp, hd) in q.dtype."""
    BH, Tp, hd = q.shape
    tk = tq                                   # square tiles: diag mask is local
    assert Tp % tq == 0

    return pl.pallas_call(
        functools.partial(_flash_kernel, scale=scale),
        out_shape=jax.ShapeDtypeStruct((BH, Tp, hd), q.dtype),
        grid_spec=pltpu.PrefetchScalarGridSpec(
            num_scalar_prefetch=0,
            grid=(BH, Tp // tq, Tp // tk),              # kv (reduction) last
            in_specs=[
                pl.BlockSpec((1, tq, hd), lambda bh, qi, ki: (bh, qi, 0)),
                pl.BlockSpec((1, tk, hd), lambda bh, qi, ki: (bh, ki, 0)),
                pl.BlockSpec((1, tk, hd), lambda bh, qi, ki: (bh, ki, 0)),
            ],
            out_specs=pl.BlockSpec((1, tq, hd), lambda bh, qi, ki: (bh, qi, 0)),
            scratch_shapes=[
                pltpu.VMEM((tq, 1), jnp.float32),       # running max m
                pltpu.VMEM((tq, 1), jnp.float32),       # running sum l
                pltpu.VMEM((tq, hd), jnp.float32),      # output accumulator
            ],
        ),
        compiler_params=pltpu.CompilerParams(
            dimension_semantics=("parallel", "parallel", "arbitrary"),
            vmem_limit_bytes=_VMEM_LIMIT),
    )(q, k, v)


# ---------------------------------------------------------------------------
# Full module forward
# ---------------------------------------------------------------------------

def causal_self_attention(x, params, n_head):
    """Eval-mode forward of the PyTorch CausalSelfAttention module.

    x: (B, T, C) f32.  params: wq/wk/wv/wp of shape (C, C) already transposed
    so y = x @ W + b (PyTorch nn.Linear is x @ W.T + b); bq/bk/bv/bp of (C,).
    """
    B, T, C = x.shape
    assert C % n_head == 0
    hd = C // n_head

    # ---- fused QKV projection (one tiled matmul instead of three) ----------
    wqkv = jnp.concatenate([params["wq"], params["wk"], params["wv"]], axis=1)
    bqkv = jnp.concatenate([params["bq"], params["bk"], params["bv"]], axis=0)
    qkv = pallas_linear(x.reshape(B * T, C), wqkv, bqkv, jnp.bfloat16)  # (B*T, 3C)

    # split heads outside the kernel: (B*T, 3C) -> (3, B, H, T, hd)
    qkv = qkv.reshape(B, T, 3, n_head, hd).transpose(2, 0, 3, 1, 4)
    q, k, v = qkv[0], qkv[1], qkv[2]                     # each (B, H, T, hd)

    # pad the sequence so it tiles; padded keys are zeros and lie at positions
    # >= T, so the causal mask (or discarded padded-query rows) hides them.
    tq = min(128, _round_up(T, 8))
    Tp = _round_up(T, tq)
    pad_t = ((0, 0), (0, 0), (0, Tp - T), (0, 0))
    q = jnp.pad(q, pad_t).reshape(B * n_head, Tp, hd)
    k = jnp.pad(k, pad_t).reshape(B * n_head, Tp, hd)
    v = jnp.pad(v, pad_t).reshape(B * n_head, Tp, hd)

    # ---- causal flash attention --------------------------------------------
    y = _flash_attention(q, k, v, scale=1.0 / math.sqrt(hd), tq=tq)

    # merge heads (no in-kernel concat): (B*H, Tp, hd) -> (B*T, C)
    y = y.reshape(B, n_head, Tp, hd)[:, :, :T, :].transpose(0, 2, 1, 3)
    y = y.reshape(B * T, C)

    # ---- output projection ---------------------------------------------------
    out = pallas_linear(y, params["wp"], params["bp"], x.dtype)
    return out.reshape(B, T, C)


# ---------------------------------------------------------------------------
# Plain-JAX reference (mirrors the PyTorch forward, eval mode) and test
# ---------------------------------------------------------------------------

def _reference(x, params, n_head):
    B, T, C = x.shape
    hd = C // n_head
    q = x @ params["wq"] + params["bq"]
    k = x @ params["wk"] + params["bk"]
    v = x @ params["wv"] + params["bv"]
    q = q.reshape(B, T, n_head, hd).transpose(0, 2, 1, 3)
    k = k.reshape(B, T, n_head, hd).transpose(0, 2, 1, 3)
    v = v.reshape(B, T, n_head, hd).transpose(0, 2, 1, 3)
    att = jnp.einsum("bhqd,bhkd->bhqk", q, k) / math.sqrt(hd)
    mask = jnp.tril(jnp.ones((T, T), dtype=bool))
    att = jnp.where(mask[None, None], att, -jnp.inf)
    att = jax.nn.softmax(att, axis=-1)
    y = jnp.einsum("bhqk,bhkd->bhqd", att, v)
    y = y.transpose(0, 2, 1, 3).reshape(B, T, C)
    return y @ params["wp"] + params["bp"]


def _run_case(key, B, T, C, n_head):
    keys = jax.random.split(key, 9)
    s = 1.0 / math.sqrt(C)
    params = {
        "wq": jax.random.uniform(keys[0], (C, C), jnp.float32, -s, s),
        "wk": jax.random.uniform(keys[1], (C, C), jnp.float32, -s, s),
        "wv": jax.random.uniform(keys[2], (C, C), jnp.float32, -s, s),
        "wp": jax.random.uniform(keys[3], (C, C), jnp.float32, -s, s),
        "bq": jax.random.uniform(keys[4], (C,), jnp.float32, -s, s),
        "bk": jax.random.uniform(keys[5], (C,), jnp.float32, -s, s),
        "bv": jax.random.uniform(keys[6], (C,), jnp.float32, -s, s),
        "bp": jax.random.uniform(keys[7], (C,), jnp.float32, -s, s),
    }
    x = jax.random.normal(keys[8], (B, T, C), jnp.float32)

    fwd = jax.jit(functools.partial(causal_self_attention, n_head=n_head))
    out = jax.block_until_ready(fwd(x, params))

    ref = _reference(x, params, n_head)
    assert out.shape == (B, T, C)
    err = float(jnp.max(jnp.abs(out - ref)))
    assert jnp.allclose(out, ref, atol=2e-2, rtol=2e-2), (
        f"mismatch vs reference (B={B},T={T},C={C},H={n_head}) max|err|={err}")


if __name__ == "__main__":
    key = jax.random.PRNGKey(0)
    k0, k1 = jax.random.split(key)

    # Small shapes consistent with the module: B=2, T(block_size)=8, C=32, H=4.
    _run_case(k0, B=2, T=8, C=32, n_head=4)
    # Larger case exercising the multi-tile matmul grid and multi-block causal
    # flash path (tile pruning + diagonal mask).
    _run_case(k1, B=2, T=256, C=128, n_head=4)

    print("KERNEL_OK")
</pallas_src>

<mosaic_0001>
module attributes {stable_mosaic.version = 11 : i64} {
  func.func @_linear_kernel(%arg0: i32, %arg1: i32, %arg2: i32, %arg3: memref<16x128xbf16, #tpu.memory_space<vmem>>, %arg4: memref<128x128xbf16, #tpu.memory_space<vmem>>, %arg5: memref<1x128xf32, #tpu.memory_space<vmem>>, %arg6: memref<16x128xbf16, #tpu.memory_space<vmem>>, %arg7: memref<16x128xf32, #tpu.memory_space<vmem>>) attributes {dimension_semantics = [#tpu.dimension_semantics<parallel>, #tpu.dimension_semantics<parallel>, #tpu.dimension_semantics<arbitrary>], iteration_bounds = array<i64: 1, 1, 1>, scalar_prefetch = 0 : i64, scratch_operands = 1 : i64, tpu.core_type = #tpu.core_type<tc>, window_params = [{transform_indices = @transform_0, window_bounds = array<i64: 16, 128>}, {transform_indices = @transform_1, window_bounds = array<i64: 128, 128>}, {transform_indices = @transform_2, window_bounds = array<i64: 1, 128>}, {transform_indices = @transform_3, window_bounds = array<i64: 16, 128>}]} {
    %c0_i32 = arith.constant 0 : i32
    %0 = arith.cmpi eq, %arg2, %c0_i32 : i32
    %1 = arith.extui %0 : i1 to i32
    %c0_i32_0 = arith.constant 0 : i32
    %2 = arith.cmpi ne, %1, %c0_i32_0 : i32
    scf.if %2 {
      %cst_10 = arith.constant 0.000000e+00 : f32
      %12 = vector.broadcast %cst_10 : f32 to vector<16x128xf32>
      %c0_11 = arith.constant 0 : index
      %c0_12 = arith.constant 0 : index
      %13 = vector.load %arg7[%c0_11, %c0_12] : memref<16x128xf32, #tpu.memory_space<vmem>>, vector<16x128xf32>
      tpu.vector_store %arg7[%c0_11, %c0_12], %12 {strides = array<i32>} : memref<16x128xf32, #tpu.memory_space<vmem>>, vector<16x128xf32>,
    } else {
    }
    %c0 = arith.constant 0 : index
    %c0_1 = arith.constant 0 : index
    %3 = vector.load %arg7[%c0, %c0_1] : memref<16x128xf32, #tpu.memory_space<vmem>>, vector<16x128xf32>
    %c0_2 = arith.constant 0 : index
    %c0_3 = arith.constant 0 : index
    %4 = vector.load %arg3[%c0_2, %c0_3] : memref<16x128xbf16, #tpu.memory_space<vmem>>, vector<16x128xbf16>
    %c0_4 = arith.constant 0 : index
    %c0_5 = arith.constant 0 : index
    %5 = vector.load %arg4[%c0_4, %c0_5] : memref<128x128xbf16, #tpu.memory_space<vmem>>, vector<128x128xbf16>
    %cst = arith.constant dense<0.000000e+00> : vector<16x128xf32>
    %6 = tpu.matmul %4, %5, %cst {dimension_numbers = #tpu.dot_dimension_numbers<[1], [0], [0], [1], [0, 0, 1, 1], [], []>} : vector<16x128xbf16>, vector<128x128xbf16>, vector<16x128xf32> -> vector<16x128xf32>
    %7 = arith.addf %3, %6 : vector<16x128xf32>
    %c0_6 = arith.constant 0 : index
    %c0_7 = arith.constant 0 : index
    %8 = vector.load %arg7[%c0_6, %c0_7] : memref<16x128xf32, #tpu.memory_space<vmem>>, vector<16x128xf32>
    tpu.vector_store %arg7[%c0_6, %c0_7], %7 {strides = array<i32>} : memref<16x128xf32, #tpu.memory_space<vmem>>, vector<16x128xf32>,
    %c0_i32_8 = arith.constant 0 : i32
    %9 = arith.cmpi eq, %arg2, %c0_i32_8 : i32
    %10 = arith.extui %9 : i1 to i32
    %c0_i32_9 = arith.constant 0 : i32
    %11 = arith.cmpi ne, %10, %c0_i32_9 : i32
    scf.if %11 {
      %c0_10 = arith.constant 0 : index
      %c0_11 = arith.constant 0 : index
      %12 = vector.load %arg7[%c0_10, %c0_11] : memref<16x128xf32, #tpu.memory_space<vmem>>, vector<16x128xf32>
      %c0_12 = arith.constant 0 : index
      %c0_13 = arith.constant 0 : index
      %13 = vector.load %arg5[%c0_12, %c0_13] : memref<1x128xf32, #tpu.memory_space<vmem>>, vector<1x128xf32>
      %14 = vector.broadcast %13 : vector<1x128xf32> to vector<16x128xf32>
      %15 = arith.addf %12, %14 : vector<16x128xf32>
      %16 = arith.truncf %15 : vector<16x128xf32> to vector<16x128xbf16>
      %c0_14 = arith.constant 0 : index
      %c0_15 = arith.constant 0 : index
      %17 = vector.load %arg6[%c0_14, %c0_15] : memref<16x128xbf16, #tpu.memory_space<vmem>>, vector<16x128xbf16>
      tpu.vector_store %arg6[%c0_14, %c0_15], %16 {strides = array<i32>} : memref<16x128xbf16, #tpu.memory_space<vmem>>, vector<16x128xbf16>,
    } else {
    }
    return
  }
  func.func @transform_0(%arg0: i32, %arg1: i32, %arg2: i32) -> (i32, i32) {
    %c0_i32 = arith.constant 0 : i32
    return %arg0, %arg2 : i32, i32
  }
  func.func @transform_1(%arg0: i32, %arg1: i32, %arg2: i32) -> (i32, i32) {
    %c0_i32 = arith.constant 0 : i32
    return %arg2, %arg1 : i32, i32
  }
  func.func @transform_2(%arg0: i32, %arg1: i32, %arg2: i32) -> (i32, i32) {
    %c0_i32 = arith.constant 0 : i32
    %c0_i32_0 = arith.constant 0 : i32
    return %c0_i32, %arg1 : i32, i32
  }
  func.func @transform_3(%arg0: i32, %arg1: i32, %arg2: i32) -> (i32, i32) {
    %c0_i32 = arith.constant 0 : i32
    return %arg0, %arg1 : i32, i32
  }
}

module attributes {stable_mosaic.version = 11 : i64} {
  func.func @_flash_kernel(%arg0: i32, %arg1: i32, %arg2: i32, %arg3: memref<1x8x8xbf16, #tpu.memory_space<vmem>>, %arg4: memref<1x8x8xbf16, #tpu.memory_space<vmem>>, %arg5: memref<1x8x8xbf16, #tpu.memory_space<vmem>>, %arg6: memref<1x8x8xbf16, #tpu.memory_space<vmem>>, %arg7: memref<8x1xf32, #tpu.memory_space<vmem>>, %arg8: memref<8x1xf32, #tpu.memory_space<vmem>>, %arg9: memref<8x8xf32, #tpu.memory_space<vmem>>) attributes {dimension_semantics = [#tpu.dimension_semantics<parallel>, #tpu.dimension_semantics<parallel>, #tpu.dimension_semantics<arbitrary>], iteration_bounds = array<i64: 8, 1, 1>, scalar_prefetch = 0 : i64, scratch_operands = 3 : i64, tpu.core_type = #tpu.core_type<tc>, window_params = [{transform_indices = @transform_0, window_bounds = array<i64: 1, 8, 8>}, {transform_indices = @transform_1, window_bounds = array<i64: 1, 8, 8>}, {transform_indices = @transform_2, window_bounds = array<i64: 1, 8, 8>}, {transform_indices = @transform_3, window_bounds = array<i64: 1, 8, 8>}]} {
    %c0_i32 = arith.constant 0 : i32
    %0 = arith.cmpi eq, %arg2, %c0_i32 : i32
    %1 = arith.extui %0 : i1 to i32
    %c0_i32_0 = arith.constant 0 : i32
    %2 = arith.cmpi ne, %1, %c0_i32_0 : i32
    scf.if %2 {
      %cst = arith.constant 0xFF800000 : f32
      %12 = vector.broadcast %cst : f32 to vector<8x1xf32>
      %c0 = arith.constant 0 : index
      %c0_5 = arith.constant 0 : index
      %13 = vector.load %arg7[%c0, %c0_5] : memref<8x1xf32, #tpu.memory_space<vmem>>, vector<8x1xf32>
      tpu.vector_store %arg7[%c0, %c0_5], %12 {strides = array<i32>} : memref<8x1xf32, #tpu.memory_space<vmem>>, vector<8x1xf32>,
      %cst_6 = arith.constant 0.000000e+00 : f32
      %14 = vector.broadcast %cst_6 : f32 to vector<8x1xf32>
      %c0_7 = arith.constant 0 : index
      %c0_8 = arith.constant 0 : index
      %15 = vector.load %arg8[%c0_7, %c0_8] : memref<8x1xf32, #tpu.memory_space<vmem>>, vector<8x1xf32>
      tpu.vector_store %arg8[%c0_7, %c0_8], %14 {strides = array<i32>} : memref<8x1xf32, #tpu.memory_space<vmem>>, vector<8x1xf32>,
      %cst_9 = arith.constant 0.000000e+00 : f32
      %16 = vector.broadcast %cst_9 : f32 to vector<8x8xf32>
      %c0_10 = arith.constant 0 : index
      %c0_11 = arith.constant 0 : index
      %17 = vector.load %arg9[%c0_10, %c0_11] : memref<8x8xf32, #tpu.memory_space<vmem>>, vector<8x8xf32>
      tpu.vector_store %arg9[%c0_10, %c0_11], %16 {strides = array<i32>} : memref<8x8xf32, #tpu.memory_space<vmem>>, vector<8x8xf32>,
    } else {
    }
    %3 = arith.cmpi slt, %arg2, %arg1 : i32
    %4 = arith.extui %3 : i1 to i32
    %c0_i32_1 = arith.constant 0 : i32
    %5 = arith.cmpi ne, %4, %c0_i32_1 : i32
    scf.if %5 {
      %c0 = arith.constant 0 : index
      %c0_5 = arith.constant 0 : index
      %c0_6 = arith.constant 0 : index
      %12 = vector.load %arg3[%c0, %c0_5, %c0_6] : memref<1x8x8xbf16, #tpu.memory_space<vmem>>, vector<1x8x8xbf16>
      %13 = vector.shape_cast %12 : vector<1x8x8xbf16> to vector<8x8xbf16>
      %c0_7 = arith.constant 0 : index
      %c0_8 = arith.constant 0 : index
      %c0_9 = arith.constant 0 : index
      %14 = vector.load %arg4[%c0_7, %c0_8, %c0_9] : memref<1x8x8xbf16, #tpu.memory_space<vmem>>, vector<1x8x8xbf16>
      %15 = vector.shape_cast %14 : vector<1x8x8xbf16> to vector<8x8xbf16>
      %c0_10 = arith.constant 0 : index
      %c0_11 = arith.constant 0 : index
      %c0_12 = arith.constant 0 : index
      %16 = vector.load %arg5[%c0_10, %c0_11, %c0_12] : memref<1x8x8xbf16, #tpu.memory_space<vmem>>, vector<1x8x8xbf16>
      %17 = vector.shape_cast %16 : vector<1x8x8xbf16> to vector<8x8xbf16>
      %18 = tpu.transpose %15, [1, 0] : vector<8x8xbf16> -> vector<8x8xbf16>
      %cst = arith.constant dense<0.000000e+00> : vector<8x8xf32>
      %19 = tpu.matmul %13, %18, %cst {dimension_numbers = #tpu.dot_dimension_numbers<[1], [0], [0], [1], [0, 0, 1, 1], [], []>} : vector<8x8xbf16>, vector<8x8xbf16>, vector<8x8xf32> -> vector<8x8xf32>
      %cst_13 = arith.constant 0.353553385 : f32
      %20 = vector.broadcast %cst_13 : f32 to vector<8x8xf32>
      %21 = arith.mulf %19, %20 : vector<8x8xf32>
      %c0_14 = arith.constant 0 : index
      %c0_15 = arith.constant 0 : index
      %22 = vector.load %arg7[%c0_14, %c0_15] : memref<8x1xf32, #tpu.memory_space<vmem>>, vector<8x1xf32>
      %cst_16 = arith.constant dense<0xFF800000> : vector<8xf32>
      %23 = vector.multi_reduction <maximumf>, %21, %cst_16 [1] : vector<8x8xf32> to vector<8xf32>
      %24 = vector.shape_cast %23 : vector<8xf32> to vector<8x1xf32>
      %25 = arith.maximumf %22, %24 : vector<8x1xf32>
      %26 = arith.subf %22, %25 : vector<8x1xf32>
      %27 = math.exp %26 : vector<8x1xf32>
      %28 = vector.broadcast %25 : vector<8x1xf32> to vector<8x8xf32>
      %29 = arith.subf %21, %28 : vector<8x8xf32>
      %30 = math.exp %29 : vector<8x8xf32>
      %c0_17 = arith.constant 0 : index
      %c0_18 = arith.constant 0 : index
      %31 = vector.load %arg8[%c0_17, %c0_18] : memref<8x1xf32, #tpu.memory_space<vmem>>, vector<8x1xf32>
      %32 = arith.mulf %27, %31 : vector<8x1xf32>
      %cst_19 = arith.constant dense<0.000000e+00> : vector<8xf32>
      %33 = vector.multi_reduction <add>, %30, %cst_19 [1] : vector<8x8xf32> to vector<8xf32>
      %34 = vector.shape_cast %33 : vector<8xf32> to vector<8x1xf32>
      %35 = arith.addf %32, %34 : vector<8x1xf32>
      %c0_20 = arith.constant 0 : index
      %c0_21 = arith.constant 0 : index
      %36 = vector.load %arg8[%c0_20, %c0_21] : memref<8x1xf32, #tpu.memory_space<vmem>>, vector<8x1xf32>
      tpu.vector_store %arg8[%c0_20, %c0_21], %35 {strides = array<i32>} : memref<8x1xf32, #tpu.memory_space<vmem>>, vector<8x1xf32>,
      %c0_22 = arith.constant 0 : index
      %c0_23 = arith.constant 0 : index
      %37 = vector.load %arg9[%c0_22, %c0_23] : memref<8x8xf32, #tpu.memory_space<vmem>>, vector<8x8xf32>
      %38 = vector.broadcast %27 : vector<8x1xf32> to vector<8x8xf32>
      %39 = arith.mulf %38, %37 : vector<8x8xf32>
      %40 = arith.truncf %30 : vector<8x8xf32> to vector<8x8xbf16>
      %cst_24 = arith.constant dense<0.000000e+00> : vector<8x8xf32>
      %41 = tpu.matmul %40, %17, %cst_24 {dimension_numbers = #tpu.dot_dimension_numbers<[1], [0], [0], [1], [0, 0, 1, 1], [], []>} : vector<8x8xbf16>, vector<8x8xbf16>, vector<8x8xf32> -> vector<8x8xf32>
      %42 = arith.addf %39, %41 : vector<8x8xf32>
      %c0_25 = arith.constant 0 : index
      %c0_26 = arith.constant 0 : index
      %43 = vector.load %arg9[%c0_25, %c0_26] : memref<8x8xf32, #tpu.memory_space<vmem>>, vector<8x8xf32>
      tpu.vector_store %arg9[%c0_25, %c0_26], %42 {strides = array<i32>} : memref<8x8xf32, #tpu.memory_space<vmem>>, vector<8x8xf32>,
      %c0_27 = arith.constant 0 : index
      %c0_28 = arith.constant 0 : index
      %44 = vector.load %arg7[%c0_27, %c0_28] : memref<8x1xf32, #tpu.memory_space<vmem>>, vector<8x1xf32>
      tpu.vector_store %arg7[%c0_27, %c0_28], %25 {strides = array<i32>} : memref<8x1xf32, #tpu.memory_space<vmem>>, vector<8x1xf32>,
    } else {
    }
    %6 = arith.cmpi eq, %arg2, %arg1 : i32
    %7 = arith.extui %6 : i1 to i32
    %c0_i32_2 = arith.constant 0 : i32
    %8 = arith.cmpi ne, %7, %c0_i32_2 : i32
    scf.if %8 {
      %c0 = arith.constant 0 : index
      %c0_5 = arith.constant 0 : index
      %c0_6 = arith.constant 0 : index
      %12 = vector.load %arg3[%c0, %c0_5, %c0_6] : memref<1x8x8xbf16, #tpu.memory_space<vmem>>, vector<1x8x8xbf16>
      %13 = vector.shape_cast %12 : vector<1x8x8xbf16> to vector<8x8xbf16>
      %c0_7 = arith.constant 0 : index
      %c0_8 = arith.constant 0 : index
      %c0_9 = arith.constant 0 : index
      %14 = vector.load %arg4[%c0_7, %c0_8, %c0_9] : memref<1x8x8xbf16, #tpu.memory_space<vmem>>, vector<1x8x8xbf16>
      %15 = vector.shape_cast %14 : vector<1x8x8xbf16> to vector<8x8xbf16>
      %c0_10 = arith.constant 0 : index
      %c0_11 = arith.constant 0 : index
      %c0_12 = arith.constant 0 : index
      %16 = vector.load %arg5[%c0_10, %c0_11, %c0_12] : memref<1x8x8xbf16, #tpu.memory_space<vmem>>, vector<1x8x8xbf16>
      %17 = vector.shape_cast %16 : vector<1x8x8xbf16> to vector<8x8xbf16>
      %18 = tpu.transpose %15, [1, 0] : vector<8x8xbf16> -> vector<8x8xbf16>
      %cst = arith.constant dense<0.000000e+00> : vector<8x8xf32>
      %19 = tpu.matmul %13, %18, %cst {dimension_numbers = #tpu.dot_dimension_numbers<[1], [0], [0], [1], [0, 0, 1, 1], [], []>} : vector<8x8xbf16>, vector<8x8xbf16>, vector<8x8xf32> -> vector<8x8xf32>
      %cst_13 = arith.constant 0.353553385 : f32
      %20 = vector.broadcast %cst_13 : f32 to vector<8x8xf32>
      %21 = arith.mulf %19, %20 : vector<8x8xf32>
      %22 = tpu.iota {dimensions = array<i32: 0>} : vector<8x8xi32>
      %23 = tpu.iota {dimensions = array<i32: 1>} : vector<8x8xi32>
      %24 = arith.cmpi sle, %23, %22 : vector<8x8xi32>
      %cst_14 = arith.constant 0xFF800000 : f32
      %25 = vector.broadcast %cst_14 : f32 to vector<8x8xf32>
      %26 = arith.select %24, %21, %25 : vector<8x8xi1>, vector<8x8xf32>
      %c0_15 = arith.constant 0 : index
      %c0_16 = arith.constant 0 : index
      %27 = vector.load %arg7[%c0_15, %c0_16] : memref<8x1xf32, #tpu.memory_space<vmem>>, vector<8x1xf32>
      %cst_17 = arith.constant dense<0xFF800000> : vector<8xf32>
      %28 = vector.multi_reduction <maximumf>, %26, %cst_17 [1] : vector<8x8xf32> to vector<8xf32>
      %29 = vector.shape_cast %28 : vector<8xf32> to vector<8x1xf32>
      %30 = arith.maximumf %27, %29 : vector<8x1xf32>
      %31 = arith.subf %27, %30 : vector<8x1xf32>
      %32 = math.exp %31 : vector<8x1xf32>
      %33 = vector.broadcast %30 : vector<8x1xf32> to vector<8x8xf32>
      %34 = arith.subf %26, %33 : vector<8x8xf32>
      %35 = math.exp %34 : vector<8x8xf32>
      %c0_18 = arith.constant 0 : index
      %c0_19 = arith.constant 0 : index
      %36 = vector.load %arg8[%c0_18, %c0_19] : memref<8x1xf32, #tpu.memory_space<vmem>>, vector<8x1xf32>
      %37 = arith.mulf %32, %36 : vector<8x1xf32>
      %cst_20 = arith.constant dense<0.000000e+00> : vector<8xf32>
      %38 = vector.multi_reduction <add>, %35, %cst_20 [1] : vector<8x8xf32> to vector<8xf32>
      %39 = vector.shape_cast %38 : vector<8xf32> to vector<8x1xf32>
      %40 = arith.addf %37, %39 : vector<8x1xf32>
      %c0_21 = arith.constant 0 : index
      %c0_22 = arith.constant 0 : index
      %41 = vector.load %arg8[%c0_21, %c0_22] : memref<8x1xf32, #tpu.memory_space<vmem>>, vector<8x1xf32>
      tpu.vector_store %arg8[%c0_21, %c0_22], %40 {strides = array<i32>} : memref<8x1xf32, #tpu.memory_space<vmem>>, vector<8x1xf32>,
      %c0_23 = arith.constant 0 : index
      %c0_24 = arith.constant 0 : index
      %42 = vector.load %arg9[%c0_23, %c0_24] : memref<8x8xf32, #tpu.memory_space<vmem>>, vector<8x8xf32>
      %43 = vector.broadcast %32 : vector<8x1xf32> to vector<8x8xf32>
      %44 = arith.mulf %43, %42 : vector<8x8xf32>
      %45 = arith.truncf %35 : vector<8x8xf32> to vector<8x8xbf16>
      %cst_25 = arith.constant dense<0.000000e+00> : vector<8x8xf32>
      %46 = tpu.matmul %45, %17, %cst_25 {dimension_numbers = #tpu.dot_dimension_numbers<[1], [0], [0], [1], [0, 0, 1, 1], [], []>} : vector<8x8xbf16>, vector<8x8xbf16>, vector<8x8xf32> -> vector<8x8xf32>
      %47 = arith.addf %44, %46 : vector<8x8xf32>
      %c0_26 = arith.constant 0 : index
      %c0_27 = arith.constant 0 : index
      %48 = vector.load %arg9[%c0_26, %c0_27] : memref<8x8xf32, #tpu.memory_space<vmem>>, vector<8x8xf32>
      tpu.vector_store %arg9[%c0_26, %c0_27], %47 {strides = array<i32>} : memref<8x8xf32, #tpu.memory_space<vmem>>, vector<8x8xf32>,
      %c0_28 = arith.constant 0 : index
      %c0_29 = arith.constant 0 : index
      %49 = vector.load %arg7[%c0_28, %c0_29] : memref<8x1xf32, #tpu.memory_space<vmem>>, vector<8x1xf32>
      tpu.vector_store %arg7[%c0_28, %c0_29], %30 {strides = array<i32>} : memref<8x1xf32, #tpu.memory_space<vmem>>, vector<8x1xf32>,
    } else {
    }
    %c0_i32_3 = arith.constant 0 : i32
    %9 = arith.cmpi eq, %arg2, %c0_i32_3 : i32
    %10 = arith.extui %9 : i1 to i32
    %c0_i32_4 = arith.constant 0 : i32
    %11 = arith.cmpi ne, %10, %c0_i32_4 : i32
    scf.if %11 {
      %c0 = arith.constant 0 : index
      %c0_5 = arith.constant 0 : index
      %12 = vector.load %arg8[%c0, %c0_5] : memref<8x1xf32, #tpu.memory_space<vmem>>, vector<8x1xf32>
      %13 = tpu.reciprocal %12 {approx = true} : vector<8x1xf32> -> vector<8x1xf32>
      %c0_6 = arith.constant 0 : index
      %c0_7 = arith.constant 0 : index
      %14 = vector.load %arg9[%c0_6, %c0_7] : memref<8x8xf32, #tpu.memory_space<vmem>>, vector<8x8xf32>
      %15 = vector.broadcast %13 : vector<8x1xf32> to vector<8x8xf32>
      %16 = arith.mulf %14, %15 : vector<8x8xf32>
      %17 = arith.truncf %16 : vector<8x8xf32> to vector<8x8xbf16>
      %c0_8 = arith.constant 0 : index
      %c0_9 = arith.constant 0 : index
      %c0_10 = arith.constant 0 : index
      %18 = vector.load %arg6[%c0_8, %c0_9, %c0_10] : memref<1x8x8xbf16, #tpu.memory_space<vmem>>, vector<1x8x8xbf16>
      %19 = vector.shape_cast %18 : vector<1x8x8xbf16> to vector<8x8xbf16>
      %20 = vector.shape_cast %17 : vector<8x8xbf16> to vector<1x8x8xbf16>
      tpu.vector_store %arg6[%c0_8, %c0_9, %c0_10], %20 {strides = array<i32>} : memref<1x8x8xbf16, #tpu.memory_space<vmem>>, vector<1x8x8xbf16>,
    } else {
    }
    return
  }
  func.func @transform_0(%arg0: i32, %arg1: i32, %arg2: i32) -> (i32, i32, i32) {
    %c0_i32 = arith.constant 0 : i32
    %c0_i32_0 = arith.constant 0 : i32
    return %arg0, %arg1, %c0_i32 : i32, i32, i32
  }
  func.func @transform_1(%arg0: i32, %arg1: i32, %arg2: i32) -> (i32, i32, i32) {
    %c0_i32 = arith.constant 0 : i32
    %c0_i32_0 = arith.constant 0 : i32
    return %arg0, %arg2, %c0_i32 : i32, i32, i32
  }
  func.func @transform_2(%arg0: i32, %arg1: i32, %arg2: i32) -> (i32, i32, i32) {
    %c0_i32 = arith.constant 0 : i32
    %c0_i32_0 = arith.constant 0 : i32
    return %arg0, %arg2, %c0_i32 : i32, i32, i32
  }
  func.func @transform_3(%arg0: i32, %arg1: i32, %arg2: i32) -> (i32, i32, i32) {
    %c0_i32 = arith.constant 0 : i32
    %c0_i32_0 = arith.constant 0 : i32
    return %arg0, %arg1, %c0_i32 : i32, i32, i32
  }
}

module attributes {stable_mosaic.version = 11 : i64} {
  func.func @_linear_kernel(%arg0: i32, %arg1: i32, %arg2: i32, %arg3: memref<16x128xbf16, #tpu.memory_space<vmem>>, %arg4: memref<128x128xbf16, #tpu.memory_space<vmem>>, %arg5: memref<1x128xf32, #tpu.memory_space<vmem>>, %arg6: memref<16x128xf32, #tpu.memory_space<vmem>>, %arg7: memref<16x128xf32, #tpu.memory_space<vmem>>) attributes {dimension_semantics = [#tpu.dimension_semantics<parallel>, #tpu.dimension_semantics<parallel>, #tpu.dimension_semantics<arbitrary>], iteration_bounds = array<i64: 1, 1, 1>, scalar_prefetch = 0 : i64, scratch_operands = 1 : i64, tpu.core_type = #tpu.core_type<tc>, window_params = [{transform_indices = @transform_0, window_bounds = array<i64: 16, 128>}, {transform_indices = @transform_1, window_bounds = array<i64: 128, 128>}, {transform_indices = @transform_2, window_bounds = array<i64: 1, 128>}, {transform_indices = @transform_3, window_bounds = array<i64: 16, 128>}]} {
    %c0_i32 = arith.constant 0 : i32
    %0 = arith.cmpi eq, %arg2, %c0_i32 : i32
    %1 = arith.extui %0 : i1 to i32
    %c0_i32_0 = arith.constant 0 : i32
    %2 = arith.cmpi ne, %1, %c0_i32_0 : i32
    scf.if %2 {
      %cst_10 = arith.constant 0.000000e+00 : f32
      %12 = vector.broadcast %cst_10 : f32 to vector<16x128xf32>
      %c0_11 = arith.constant 0 : index
      %c0_12 = arith.constant 0 : index
      %13 = vector.load %arg7[%c0_11, %c0_12] : memref<16x128xf32, #tpu.memory_space<vmem>>, vector<16x128xf32>
      tpu.vector_store %arg7[%c0_11, %c0_12], %12 {strides = array<i32>} : memref<16x128xf32, #tpu.memory_space<vmem>>, vector<16x128xf32>,
    } else {
    }
    %c0 = arith.constant 0 : index
    %c0_1 = arith.constant 0 : index
    %3 = vector.load %arg7[%c0, %c0_1] : memref<16x128xf32, #tpu.memory_space<vmem>>, vector<16x128xf32>
    %c0_2 = arith.constant 0 : index
    %c0_3 = arith.constant 0 : index
    %4 = vector.load %arg3[%c0_2, %c0_3] : memref<16x128xbf16, #tpu.memory_space<vmem>>, vector<16x128xbf16>
    %c0_4 = arith.constant 0 : index
    %c0_5 = arith.constant 0 : index
    %5 = vector.load %arg4[%c0_4, %c0_5] : memref<128x128xbf16, #tpu.memory_space<vmem>>, vector<128x128xbf16>
    %cst = arith.constant dense<0.000000e+00> : vector<16x128xf32>
    %6 = tpu.matmul %4, %5, %cst {dimension_numbers = #tpu.dot_dimension_numbers<[1], [0], [0], [1], [0, 0, 1, 1], [], []>} : vector<16x128xbf16>, vector<128x128xbf16>, vector<16x128xf32> -> vector<16x128xf32>
    %7 = arith.addf %3, %6 : vector<16x128xf32>
    %c0_6 = arith.constant 0 : index
    %c0_7 = arith.constant 0 : index
    %8 = vector.load %arg7[%c0_6, %c0_7] : memref<16x128xf32, #tpu.memory_space<vmem>>, vector<16x128xf32>
    tpu.vector_store %arg7[%c0_6, %c0_7], %7 {strides = array<i32>} : memref<16x128xf32, #tpu.memory_space<vmem>>, vector<16x128xf32>,
    %c0_i32_8 = arith.constant 0 : i32
    %9 = arith.cmpi eq, %arg2, %c0_i32_8 : i32
    %10 = arith.extui %9 : i1 to i32
    %c0_i32_9 = arith.constant 0 : i32
    %11 = arith.cmpi ne, %10, %c0_i32_9 : i32
    scf.if %11 {
      %c0_10 = arith.constant 0 : index
      %c0_11 = arith.constant 0 : index
      %12 = vector.load %arg7[%c0_10, %c0_11] : memref<16x128xf32, #tpu.memory_space<vmem>>, vector<16x128xf32>
      %c0_12 = arith.constant 0 : index
      %c0_13 = arith.constant 0 : index
      %13 = vector.load %arg5[%c0_12, %c0_13] : memref<1x128xf32, #tpu.memory_space<vmem>>, vector<1x128xf32>
      %14 = vector.broadcast %13 : vector<1x128xf32> to vector<16x128xf32>
      %15 = arith.addf %12, %14 : vector<16x128xf32>
      %c0_14 = arith.constant 0 : index
      %c0_15 = arith.constant 0 : index
      %16 = vector.load %arg6[%c0_14, %c0_15] : memref<16x128xf32, #tpu.memory_space<vmem>>, vector<16x128xf32>
      tpu.vector_store %arg6[%c0_14, %c0_15], %15 {strides = array<i32>} : memref<16x128xf32, #tpu.memory_space<vmem>>, vector<16x128xf32>,
    } else {
    }
    return
  }
  func.func @transform_0(%arg0: i32, %arg1: i32, %arg2: i32) -> (i32, i32) {
    %c0_i32 = arith.constant 0 : i32
    return %arg0, %arg2 : i32, i32
  }
  func.func @transform_1(%arg0: i32, %arg1: i32, %arg2: i32) -> (i32, i32) {
    %c0_i32 = arith.constant 0 : i32
    return %arg2, %arg1 : i32, i32
  }
  func.func @transform_2(%arg0: i32, %arg1: i32, %arg2: i32) -> (i32, i32) {
    %c0_i32 = arith.constant 0 : i32
    %c0_i32_0 = arith.constant 0 : i32
    return %c0_i32, %arg1 : i32, i32
  }
  func.func @transform_3(%arg0: i32, %arg1: i32, %arg2: i32) -> (i32, i32) {
    %c0_i32 = arith.constant 0 : i32
    return %arg0, %arg1 : i32, i32
  }
}

</mosaic_0001>

<bundles_post_ra>
// kernel: causal_self_attention.3
= control target key start
LH: loop header
LB: loop body
LE: loop exit
PB: predicated region body
PF: predicated region fallthrough
CT: control target
= control target key end

     0   :  { %v227_v0 = vmov 0.0   ;;  %vm228_vm0 = vmmov 0   ;;  %s282_s1 = inlined_call_operand.vmem [shape: bf16[128,128], index: 1, kind: input, shape index: {}]   ;;  %s283_s0 = inlined_call_operand.vmem [shape: bf16[16,128], index: 0, kind: input, shape index: {}]   ;;  %s284_s2 = inlined_call_operand.vmem [shape: f32[1,128], index: 2, kind: input, shape index: {}]   ;;  %s285_s3 = inlined_call_operand.vmem [shape: bf16[16,128], index: 3, kind: output, shape index: {}]  }
   0x1   :  { %196 = vmatprep.subr.bf16.mxu0 %v227_v0  ;;  %v218_v1 = vld [vmem:[%s282_s1 + $0x38] sm:$0xff]   ;;  %212 = vmatprep.mubr.msk.bf16.mxu0 %vm228_vm0, %v227_v0  ;;  %v219_v2 = vld [vmem:[%s282_s1 + $0x30] sm:$0xff]   ;;  %v220_v3 = vld [vmem:[%s282_s1 + $0x28] sm:$0xff]  }
   0x2   :  { %197 = vmatpush3.bf16.msra.mxu0 %v218_v1  ;;  %v221_v4 = vld [vmem:[%s282_s1 + $0x20] sm:$0xff]   ;;  %v222_v5 = vld [vmem:[%s282_s1 + $0x18] sm:$0xff]   ;;  %v223_v6 = vld [vmem:[%s282_s1 + $0x10] sm:$0xff]  }
   0x3   :  { %198 = vmatprep.subr.bf16.mxu0 %v227_v0  ;;  %v224_v7 = vld [vmem:[%s282_s1 + $0x8] sm:$0xff]   ;;  %v225_v8 = vld [vmem:[%s282_s1] sm:$0xff]  }
   0x4   :  { %v226_v9 = vld [vmem:[%s283_s0] sm:$0xff]  }
   0x5   :  { %v177_v11 = vld [vmem:[%s284_s2] ss:$0 sm:$0xff] }
   0x6   :  { %199 = vmatpush3.bf16.msra.mxu0 %v219_v2 }
   0x7   :  { %200 = vmatprep.subr.bf16.mxu0 %v227_v0 }
   0xa   :  { %201 = vmatpush3.bf16.msra.mxu0 %v220_v3 }
   0xb   :  { %202 = vmatprep.subr.bf16.mxu0 %v227_v0 }
   0xe   :  { %203 = vmatpush3.bf16.msra.mxu0 %v221_v4 }
   0xf   :  { %204 = vmatprep.subr.bf16.mxu0 %v227_v0 }
  0x12   :  { %205 = vmatpush3.bf16.msra.mxu0 %v222_v5 }
  0x13   :  { %206 = vmatprep.subr.bf16.mxu0 %v227_v0 }
  0x16   :  { %207 = vmatpush3.bf16.msra.mxu0 %v223_v6 }
  0x17   :  { %208 = vmatprep.subr.bf16.mxu0 %v227_v0 }
  0x1a   :  { %209 = vmatpush3.bf16.msra.mxu0 %v224_v7 }
  0x1b   :  { %210 = vmatprep.subr.bf16.mxu0 %v227_v0 }
  0x1e   :  { %211 = vmatpush3.bf16.msra.mxu0 %v225_v8 }
  0x21   :  { %213 = vmatmul.mubr.bf16.vlgmr.msra.gmra.mxu0 %v226_v9 }
  0xe1   :  { %v129_v10 = vpop.f32.mrf.mxu0 }
  0xe2   :  { %v152_v14 = vadd.f32 %v177_v11, %v129_v10 }
  0xe3   :  { %v214_v12 = vpop.f32.mrf.mxu0 }
  0xe5   :  { %v132_v13 = vpop.f32.mrf.mxu0 }
  0xe6   :  { %v153_v15 = vadd.f32 %v177_v11, %v132_v13 }
  0xe7   :  { %v215_v16 = vpop.f32.mrf.mxu0 }
  0xe8   :  { %v185_v17 = vpack.c.bf16 %v153_v15, %v152_v14 }
  0xea   :  { %186 = vst [vmem:[%s285_s3] sm:$0xff] %v185_v17  }

// kernel: causal_self_attention.5
= control target key start
LH: loop header
LB: loop body
LE: loop exit
PB: predicated region body
PF: predicated region fallthrough
CT: control target
= control target key end

     0   :  { %v210_v0 = vmov 0.0   ;;  %vm211_vm0 = vmmov 0   ;;  %s268_s1 = inlined_call_operand.vmem [shape: bf16[128,128], index: 1, kind: input, shape index: {}]   ;;  %s269_s0 = inlined_call_operand.vmem [shape: bf16[16,128], index: 0, kind: input, shape index: {}]   ;;  %s270_s2 = inlined_call_operand.vmem [shape: f32[1,128], index: 2, kind: input, shape index: {}]   ;;  %s271_s3 = inlined_call_operand.vmem [shape: f32[16,128], index: 3, kind: output, shape index: {}]  }
   0x1   :  { %179 = vmatprep.subr.bf16.mxu0 %v210_v0  ;;  %v201_v1 = vld [vmem:[%s268_s1 + $0x38] sm:$0xff]   ;;  %195 = vmatprep.mubr.msk.bf16.mxu0 %vm211_vm0, %v210_v0  ;;  %v202_v2 = vld [vmem:[%s268_s1 + $0x30] sm:$0xff]   ;;  %v203_v3 = vld [vmem:[%s268_s1 + $0x28] sm:$0xff]  }
   0x2   :  { %180 = vmatpush3.bf16.msra.mxu0 %v201_v1  ;;  %v204_v4 = vld [vmem:[%s268_s1 + $0x20] sm:$0xff]   ;;  %v205_v5 = vld [vmem:[%s268_s1 + $0x18] sm:$0xff]   ;;  %v206_v6 = vld [vmem:[%s268_s1 + $0x10] sm:$0xff]  }
   0x3   :  { %181 = vmatprep.subr.bf16.mxu0 %v210_v0  ;;  %v207_v7 = vld [vmem:[%s268_s1 + $0x8] sm:$0xff]   ;;  %v208_v8 = vld [vmem:[%s268_s1] sm:$0xff]  }
   0x4   :  { %v209_v9 = vld [vmem:[%s269_s0] sm:$0xff]  }
   0x5   :  { %v169_v10 = vld [vmem:[%s270_s2] ss:$0 sm:$0xff] }
   0x6   :  { %182 = vmatpush3.bf16.msra.mxu0 %v202_v2 }
   0x7   :  { %183 = vmatprep.subr.bf16.mxu0 %v210_v0 }
   0xa   :  { %184 = vmatpush3.bf16.msra.mxu0 %v203_v3 }
   0xb   :  { %185 = vmatprep.subr.bf16.mxu0 %v210_v0 }
   0xe   :  { %186 = vmatpush3.bf16.msra.mxu0 %v204_v4 }
   0xf   :  { %187 = vmatprep.subr.bf16.mxu0 %v210_v0 }
  0x12   :  { %188 = vmatpush3.bf16.msra.mxu0 %v205_v5 }
  0x13   :  { %189 = vmatprep.subr.bf16.mxu0 %v210_v0 }
  0x16   :  { %190 = vmatpush3.bf16.msra.mxu0 %v206_v6 }
  0x17   :  { %191 = vmatprep.subr.bf16.mxu0 %v210_v0 }
  0x1a   :  { %192 = vmatpush3.bf16.msra.mxu0 %v207_v7 }
  0x1b   :  { %193 = vmatprep.subr.bf16.mxu0 %v210_v0 }
  0x1e   :  { %194 = vmatpush3.bf16.msra.mxu0 %v208_v8 }
  0x21   :  { %196 = vmatmul.mubr.bf16.vlgmr.msra.gmra.mxu0 %v209_v9 }
  0xe1   :  { %v129_v11 = vpop.f32.mrf.mxu0 }
  0xe2   :  { %v152_v12 = vadd.f32 %v169_v10, %v129_v11 }
  0xe3   :  { %v197_v13 = vpop.f32.mrf.mxu0 }
  0xe4   :  { %154 = vst [vmem:[%s271_s3] sm:$0xff] %v152_v12 }
  0xe5   :  { %v132_v14 = vpop.f32.mrf.mxu0 }
  0xe6   :  { %v153_v15 = vadd.f32 %v169_v10, %v132_v14 }
  0xe7   :  { %v198_v16 = vpop.f32.mrf.mxu0 }
  0xe8   :  { %155 = vst [vmem:[%s271_s3 + $0x8] sm:$0xff] %v153_v15 }

// kernel: causal_self_attention.4
= control target key start
LH: loop header
LB: loop body
LE: loop exit
PB: predicated region body
PF: predicated region fallthrough
CT: control target
= control target key end

     0   :  { %s787_s12 = smov 0   ;;  %s789_s13 = smov 0   ;;  %s843_s0 = inlined_call_operand.vmem [shape: bf16[8,8,8], index: 0, kind: input, shape index: {}]   ;;  %s844_s1 = inlined_call_operand.vmem [shape: bf16[8,8,8], index: 1, kind: input, shape index: {}]   ;;  %s845_s2 = inlined_call_operand.vmem [shape: bf16[8,8,8], index: 2, kind: input, shape index: {}]   ;;  %s846_s3 = inlined_call_operand.vmem [shape: bf16[8,8,8], index: 3, kind: output, shape index: {}]  }
   0x1   :  { %s791_s14 = smov 0  }
   0x2 LB: > { %s32_s15 = sadd.s32 1, %s757_s13  ;;  %p676_p0 = scmp.ge.s32.totalorder %s761_s14, 1  ;;  %s761_s14 = sphi %s791_s14, %s13_s14   ;;  %s757_s13 = sphi %s789_s13, %s848_s13   ;;  %s753_s12 = sphi %s787_s12, %s847_s12  }
   0x3   : > { %p34_p1 = scmp.ge.s32.totalorder %s32_s15, 8  ;;  %p190_p2 = scmp.lt.s32.totalorder %s761_s14, 9 }
   0x5   : > { %s850_s15 = smov (%p34_p1, %s32_s15), 0  ;;  %p191_p3 = pnand %p676_p0, %p190_p2 }
   0x6   : > { %p232_p4 = scmp.lt.s32.totalorder (!%p191_p3), %s753_s12, 7 }
   0x7   : > { %194 = sbr.rel (%p191_p3) target bundleno = 795 (0x31b), region = 32 }
   0xc   : > { %vm268_vm0 = vcmask 64512   ;;  %v763_v0 = vmov 0.0   ;;  %vm764_vm1 = vmmov 0   ;;  %s852_s12 = smov (!%p232_p4, %s753_s12), 7  ;;  %vm265_vm2 = vcmask 7168  }
   0xd   : > { %691 = vmatprep.subr.bf16.mxu0 %v763_v0  ;;  %269 = vst.msk [vmem:[#allocation4] sm:$0xff] %vm268_vm0, %v763_v0  ;;  %693 = vmatprep.mubr.msk.bf16.mxu0 %vm764_vm1, %v763_v0  ;;  %s806_s16 = sshll.u32 %s852_s12, 2  ;;  %v765_v4 = vmov -inf   ;;  %v462_v5 = vlaneseq  ;;  %v766_v15 = vmov 0   ;;  %vm503_vm4 = vcmask 1043456  }
   0xe   : > { %697 = vmatprep.subr.bf16.mxu1 %v763_v0  ;;  %699 = vmatprep.mubr.msk.bf16.mxu1 %vm764_vm1, %v763_v0  ;;  %s245_s19 = scalar_lea.vmem %s844_s1, %s806_s16  ;;  %s238_s22 = scalar_lea.vmem %s843_s0, %s806_s16  ;;  %266 = vst.msk [vmem:[#allocation2] sm:$0xff] %vm265_vm2, %v765_v4  ;;  %267 = vst.msk [vmem:[#allocation3] sm:$0xff] %vm265_vm2, %v763_v0  ;;  %vm563_vm5 = vcmask 60416  }
   0xf   : > { %v412_v1 = vld [vmem:[%s245_s19] sm:$0xf]  ;;  %v463_v6 = vshrl.u32 %v462_v5, 7  ;;  %v465_v7 = vand.u32 127, %v462_v5  ;;  %731 = vset.pattern.permute.xlu0 %v766_v15  ;;  %732 = vset.pattern.permute.xlu1 %v766_v15  ;;  %s252_s25 = scalar_lea.vmem %s845_s2, %s806_s16  ;;  %s259_s28 = scalar_lea.vmem %s846_s3, %s806_s16 }
  0x10   : > { %v419_v2 = vsel %vm268_vm0, %v412_v1, 0  ;;  %v411_v3 = vld [vmem:[%s238_s22] sm:$0xf] }
  0x11   : > { %692 = vmatpush3.bf16.xpose.msra.mxu0 %v419_v2  ;;  %vm466_vm3 = vcmp.le.s32.totalorder %v465_v7, %v463_v6  ;;  %v413_v20 = vld [vmem:[%s252_s25] sm:$0xf] }
  0x12   : > { %v505_v21 = vsel %vm503_vm4, %v413_v20, 0 }
  0x13   : > { %698 = vmatpush3.bf16.msra.mxu1 %v505_v21 }
  0x14   : > { %v492_v36 = vld [vmem:[#allocation4] sm:$0xff] }
  0x15   : > { %v468_v16 = vld [vmem:[#allocation2] sm:$0xff]  ;;  %v484_v30 = vld [vmem:[#allocation3] sm:$0xff] }
  0x18   : > { %694 = vmatmul.mubr.msk.bf16.vlgmr.msra.gmra.mxu0 %vm268_vm0, %v411_v3 }
  0xd8   : > { %v455_v8 = vpop.f32.mrf.mxu0 }
  0xd9   : > { %v461_v9 = vmul.f32 0.35355338, %v455_v8 }
  0xda   : > { %v695_v10 = vpop.f32.mrf.mxu0 }
  0xdb   : > { %v467_v11 = vsel %vm466_vm3, %v461_v9, -inf }
  0xdc   : > { %v458_v12 = vpop.f32.mrf.mxu0  ;;  %v469_v13 = vsel %vm268_vm0, %v467_v11, -inf }
  0xdd   : > { %470 = vmax.xlane.f32.xlu0 %v469_v13 }
  0xde   : > { %v696_v14 = vpop.f32.mrf.mxu0 }
 0x166   : > { %v471_v17 = vpop.xlane.xlu0 %470 }
 0x167   : > { %v472_v18 = vmax.f32 %v468_v16, %v471_v17 }
 0x169   : > { %v473_v19 = vsub.f32 %v468_v16, %v472_v18  ;;  %549 = vst.msk [vmem:[#allocation2] sm:$0xff] %vm265_vm2, %v472_v18  ;;  %478 = vperm.xlu0 %731, %v472_v18  }
 0x16b   : > { %v474_v26 = vmul.f32 1.442695, %v473_v19 }
 0x1e4   : > { %v479_v22 = vpop.permute.xlu0 %478 }
 0x1e5   : > { %v481_v23 = vsub.f32 %v467_v11, %v479_v22 }
 0x1e7   : > { %v482_v24 = vmul.f32 1.442695, %v481_v23 }
 0x1e9   : > { %733 = vpow2.f32 %v482_v24 }
 0x1ea   : > { %735 = vpow2.f32 %v474_v26 }
 0x1f6   : > { %v734_v25 = vpop.eup %733 }
 0x1f7   : > { %v486_v27 = vsel %vm268_vm0, %v734_v25, 0.0  ;;  %v499_v28 = vpack.c.bf16 %v734_v25, %v734_v25  ;;  %v736_v29 = vpop.eup %735 }
 0x1f8   : > { %487 = vadd.xlane.f32.xlu1 %v486_v27  ;;  %v485_v31 = vmul.f32 %v736_v29, %v484_v30 }
 0x1f9   : > { %700 = vmatmul.mubr.msk.bf16.vlgmr.msra.gmra.mxu1 %vm268_vm0, %v499_v28 }
 0x209   : > { %495 = vperm.xlu1 %732, %v736_v29  }
 0x281   : > { %v488_v32 = vpop.xlane.xlu1 %487 }
 0x282   : > { %v489_v33 = vadd.f32 %v488_v32, %v485_v31 }
 0x284   : > { %491 = vst.msk [vmem:[#allocation3] sm:$0xff] %vm265_vm2, %v489_v33 }
 0x285   : > { %v496_v37 = vpop.permute.xlu1 %495 }
 0x286   : > { %v498_v38 = vmul.f32 %v496_v37, %v492_v36 }
 0x28b   : > { %v553_v34 = vld [vmem:[#allocation3] sm:$0xff] }
 0x28c   : > { %737 = vrcp.f32 %v553_v34 }
 0x299   : > { %v738_v35 = vpop.eup %737 }
 0x29a   : > { %558 = vperm.xlu1 %732, %v738_v35  }
 0x2b9   : > { %v541_v39 = vpop.f32.mrf.mxu1 }
 0x2ba   : > { %v547_v40 = vadd.f32 %v541_v39, %v498_v38 }
 0x2bb   : > { %v701_v41 = vpop.f32.mrf.mxu1 }
 0x2bc   : > { %548 = vst.msk [vmem:[#allocation4] sm:$0xff] %vm268_vm0, %v547_v40 }
 0x2bd   : > { %v544_v42 = vpop.f32.mrf.mxu1 }
 0x2bf   : > { %v702_v43 = vpop.f32.mrf.mxu1 }
 0x2c3   : > { %v555_v44 = vld [vmem:[#allocation4] sm:$0xff] }
 0x315   : > { %v559_v45 = vpop.permute.xlu1 %558 }
 0x316   : > { %v561_v46 = vmul.f32 %v559_v45, %v555_v44 }
 0x318   : > { %v562_v47 = vpack.c.bf16 %v561_v46, %v561_v46 }
 0x31a   : > { %564 = vst.msk [vmem:[%s259_s28] sm:$0xf] %vm563_vm5, %v562_v47 }
 0x31b PF: > { %s13_s14 = sadd.s32 1, %s761_s14   ;;  %s847_s12 = smov %s757_s13 }
 0x31c   : > { %p10_p5 = scmp.ge.s32.totalorder %s13_s14, 10   ;;  %s848_s13 = smov %s850_s15 }
 0x31e   :  { %12 = sbr.rel (!%p10_p5) target bundleno = 2 (0x2), region = 84 }

</bundles_post_ra>
